<compile_context>
chip_gen: v5e
topology: v5e:2x2
jax: 0.10.0
libtpu: 0.0.40
codegen_flags: <defaults>
</compile_context>

<pallas_src>
import math

import jax
import jax.numpy as jnp
import numpy as np
from jax import lax
from jax.experimental import pallas as pl
from jax.experimental.pallas import tpu as pltpu

# ---- model hyperparameters (small, consistent with the module) ----
BATCH = 2
SEQ = 8
HIDDEN = 32
NUM_HEADS = 4
HEAD_DIM = HIDDEN // NUM_HEADS
LN_EPS = 1e-12
NEG_BIG = -1e30   # additive mask value: exp() of it underflows to exactly 0.0 in f32

# dropout p=0 and eval mode => both dropouts are identity.


def lean_self_attn_kernel(x_ref, mask_ref, ln_g_ref, ln_b_ref,
                          wqkv_ref, bqkv_ref, wout_ref, bout_ref,
                          out_ref, probs_ref):
    # x_ref: (B*S, H) f32; mask_ref: (B*S, B*S) block-diagonal additive float mask
    x = x_ref[...]

    # ---- pre LayerNorm (biased variance, eps=1e-12, like torch.nn.LayerNorm) ----
    mu = jnp.mean(x, axis=-1, keepdims=True)
    var = jnp.mean((x - mu) ** 2, axis=-1, keepdims=True)
    x_ln = (x - mu) * lax.rsqrt(var + LN_EPS)
    x_ln = x_ln * ln_g_ref[...] + ln_b_ref[...]             # (1,H) broadcasts over rows

    # ---- fused QKV projection for the whole batch: (B*S,H) @ (H,3H) + (1,3H) ----
    # (K columns of W_qkv / b_qkv were pre-scaled by 1/sqrt(head_dim) on the host.)
    qkv = jnp.dot(x_ln, wqkv_ref[...],
                  preferred_element_type=jnp.float32) + bqkv_ref[...]

    mask = mask_ref[...]                                    # (B*S, B*S)
    w_out = wout_ref[...]                                   # (H, H), loaded once

    acc = None
    probs_tiles = []
    # heads unrolled at trace time
    for h in range(NUM_HEADS):
        lo = h * HEAD_DIM
        qh = qkv[:, lo:lo + HEAD_DIM]                                  # (B*S, HD)
        kh = qkv[:, HIDDEN + lo:HIDDEN + lo + HEAD_DIM]                # (B*S, HD), pre-scaled
        vh = qkv[:, 2 * HIDDEN + lo:2 * HIDDEN + lo + HEAD_DIM]        # (B*S, HD)

        # Scores for all (batch, query, key) pairs at once; cross-batch pairs are knocked
        # out by the block-diagonal mask.  Contract on the last axes: no transpose.
        scores = lax.dot_general(qh, kh, (((1,), (1,)), ((), ())),
                                 preferred_element_type=jnp.float32) + mask

        # softmax over the key dimension
        m = jnp.max(scores, axis=-1, keepdims=True)
        e = jnp.exp(scores - m)
        denom = jnp.sum(e, axis=-1, keepdims=True)
        probs = e * pl.reciprocal(denom, approx=False)                 # (B*S, B*S)

        # Compress the block-diagonal probs to (B*S, S): off-diagonal blocks are exactly
        # zero, so summing the B lane-groups keeps only each row's own-batch block.
        comp = probs[:, :SEQ]
        for b in range(1, BATCH):
            comp = comp + probs[:, b * SEQ:(b + 1) * SEQ]
        probs_tiles.append(comp)

        # context and per-head accumulated output projection (sublane-aligned W_out rows);
        # mathematically identical to concat(heads) @ W_out but with no lane re-pack.
        ctx = jnp.dot(probs, vh, preferred_element_type=jnp.float32)   # (B*S, HD)
        part = jnp.dot(ctx, w_out[lo:lo + HEAD_DIM, :],
                       preferred_element_type=jnp.float32)             # (B*S, H)
        acc = part if acc is None else acc + part

    # ---- output bias + residual, single stores ----
    out_ref[...] = acc + bout_ref[...] + x                             # (B*S, H)
    probs_ref[...] = jnp.concatenate(probs_tiles, axis=-1)             # (B*S, NUM_HEADS*S)


def lean_self_attention(x, mask, params):
    """x: (B,S,H) f32; mask: additive float (B,S,S). Returns (out (B,S,H), probs (B,NH,S,S))."""
    B, S, H = x.shape
    ln_g, ln_b, w_qkv, b_qkv, w_out, b_out = params

    # Fold 1/sqrt(head_dim) into the K columns of the QKV projection (one-time, constant).
    scale = 1.0 / math.sqrt(HEAD_DIM)
    col_scale = jnp.concatenate([jnp.ones((H,), jnp.float32),
                                 jnp.full((H,), scale, jnp.float32),
                                 jnp.ones((H,), jnp.float32)])
    w_qkv_s = w_qkv * col_scale[None, :]
    b_qkv_s = b_qkv * col_scale[None, :]

    # Block-diagonal additive mask over the fused (batch*seq) axis:
    # within-batch blocks = user mask; cross-batch entries = NEG_BIG (-> exact-zero probs).
    mask_full = jnp.full((B, S, B, S), NEG_BIG, jnp.float32)
    mask_full = mask_full.at[jnp.arange(B), :, jnp.arange(B), :].set(mask)
    mask_full = mask_full.reshape(B * S, B * S)

    x2d = x.reshape(B * S, H)

    vmem = pl.BlockSpec(memory_space=pltpu.MemorySpace.VMEM)
    out2d, probs2d = pl.pallas_call(
        lean_self_attn_kernel,
        out_shape=(
            jax.ShapeDtypeStruct((B * S, H), jnp.float32),
            jax.ShapeDtypeStruct((B * S, NUM_HEADS * S), jnp.float32),
        ),
        in_specs=[vmem] * 8,
        out_specs=(vmem, vmem),
    )(x2d, mask_full, ln_g, ln_b, w_qkv_s, b_qkv_s, w_out, b_out)

    out = out2d.reshape(B, S, H)
    probs = probs2d.reshape(B, S, NUM_HEADS, S).transpose(0, 2, 1, 3)
    return out, probs


def reference(x, mask, params):
    """Pure-JAX reference mirroring the PyTorch forward, for verification."""
    ln_g, ln_b, w_qkv, b_qkv, w_out, b_out = params
    mu = jnp.mean(x, axis=-1, keepdims=True)
    var = jnp.mean((x - mu) ** 2, axis=-1, keepdims=True)
    x_ln = (x - mu) / jnp.sqrt(var + LN_EPS) * ln_g[0] + ln_b[0]
    qkv = x_ln @ w_qkv + b_qkv[0]
    q, k, v = jnp.split(qkv, 3, axis=-1)
    B, S, H = x.shape
    q = q.reshape(B, S, NUM_HEADS, HEAD_DIM).transpose(0, 2, 1, 3)
    k = k.reshape(B, S, NUM_HEADS, HEAD_DIM).transpose(0, 2, 1, 3)
    v = v.reshape(B, S, NUM_HEADS, HEAD_DIM).transpose(0, 2, 1, 3)
    scores = jnp.einsum("bhqd,bhkd->bhqk", q, k / math.sqrt(HEAD_DIM))
    scores = scores + mask[:, None, :, :]
    probs = jax.nn.softmax(scores, axis=-1)
    attn = jnp.einsum("bhqk,bhkd->bhqd", probs, v)
    attn = attn.transpose(0, 2, 1, 3).reshape(B, S, H)
    out = attn @ w_out + b_out[0] + x
    return out, probs


if __name__ == "__main__":
    key = jax.random.PRNGKey(0)
    k_x, k_g, k_b, k_wq, k_bq, k_wo, k_bo, k_m = jax.random.split(key, 8)

    # deterministic synthetic parameters (shapes from the module __init__),
    # stored as (in_features, out_features) so the kernel computes x @ W + b
    ln_g = 1.0 + 0.01 * jax.random.normal(k_g, (1, HIDDEN), jnp.float32)
    ln_b = 0.01 * jax.random.normal(k_b, (1, HIDDEN), jnp.float32)
    w_qkv = jax.random.normal(k_wq, (HIDDEN, 3 * HIDDEN), jnp.float32) / math.sqrt(HIDDEN)
    b_qkv = 0.01 * jax.random.normal(k_bq, (1, 3 * HIDDEN), jnp.float32)
    w_out = jax.random.normal(k_wo, (HIDDEN, HIDDEN), jnp.float32) / math.sqrt(HIDDEN)
    b_out = 0.01 * jax.random.normal(k_bo, (1, HIDDEN), jnp.float32)
    params = (ln_g, ln_b, w_qkv, b_qkv, w_out, b_out)

    # inputs
    x = jax.random.normal(k_x, (BATCH, SEQ, HIDDEN), jnp.float32)
    # additive float mask: 0 for visible, large negative for masked
    # (mask the last 2 kv positions of the second batch element)
    mask = jnp.zeros((BATCH, SEQ, SEQ), jnp.float32)
    mask = mask.at[1, :, -2:].set(-1e9)

    out, probs = lean_self_attention(x, mask, params)
    out = jax.block_until_ready(out)
    probs = jax.block_until_ready(probs)

    ref_out, ref_probs = reference(x, mask, params)
    np.testing.assert_allclose(np.asarray(out), np.asarray(ref_out), rtol=1e-5, atol=1e-5)
    np.testing.assert_allclose(np.asarray(probs), np.asarray(ref_probs), rtol=1e-5, atol=1e-5)

    print("KERNEL_OK")
</pallas_src>

<mosaic_0001>
module attributes {stable_mosaic.version = 11 : i64} {
  func.func @lean_self_attn_kernel(%arg0: memref<16x32xf32, #tpu.memory_space<vmem>>, %arg1: memref<16x16xf32, #tpu.memory_space<vmem>>, %arg2: memref<1x32xf32, #tpu.memory_space<vmem>>, %arg3: memref<1x32xf32, #tpu.memory_space<vmem>>, %arg4: memref<32x96xf32, #tpu.memory_space<vmem>>, %arg5: memref<1x96xf32, #tpu.memory_space<vmem>>, %arg6: memref<32x32xf32, #tpu.memory_space<vmem>>, %arg7: memref<1x32xf32, #tpu.memory_space<vmem>>, %arg8: memref<16x32xf32, #tpu.memory_space<vmem>>, %arg9: memref<16x32xf32, #tpu.memory_space<vmem>>) attributes {dimension_semantics = [], scalar_prefetch = 0 : i64, scratch_operands = 0 : i64, tpu.core_type = #tpu.core_type<tc>} {
    %c0 = arith.constant 0 : index
    %c0_0 = arith.constant 0 : index
    %0 = vector.load %arg0[%c0, %c0_0] : memref<16x32xf32, #tpu.memory_space<vmem>>, vector<16x32xf32>
    %cst = arith.constant dense<0.000000e+00> : vector<16xf32>
    %1 = vector.multi_reduction <add>, %0, %cst [1] : vector<16x32xf32> to vector<16xf32>
    %2 = vector.shape_cast %1 : vector<16xf32> to vector<16x1xf32>
    %cst_1 = arith.constant 3.200000e+01 : f32
    %3 = vector.broadcast %cst_1 : f32 to vector<16x1xf32>
    %4 = arith.divf %2, %3 : vector<16x1xf32>
    %5 = vector.broadcast %4 : vector<16x1xf32> to vector<16x32xf32>
    %6 = arith.subf %0, %5 : vector<16x32xf32>
    %7 = arith.mulf %6, %6 : vector<16x32xf32>
    %cst_2 = arith.constant dense<0.000000e+00> : vector<16xf32>
    %8 = vector.multi_reduction <add>, %7, %cst_2 [1] : vector<16x32xf32> to vector<16xf32>
    %9 = vector.shape_cast %8 : vector<16xf32> to vector<16x1xf32>
    %cst_3 = arith.constant 3.200000e+01 : f32
    %10 = vector.broadcast %cst_3 : f32 to vector<16x1xf32>
    %11 = arith.divf %9, %10 : vector<16x1xf32>
    %12 = vector.broadcast %4 : vector<16x1xf32> to vector<16x32xf32>
    %13 = arith.subf %0, %12 : vector<16x32xf32>
    %cst_4 = arith.constant 9.99999996E-13 : f32
    %14 = vector.broadcast %cst_4 : f32 to vector<16x1xf32>
    %15 = arith.addf %11, %14 : vector<16x1xf32>
    %16 = math.rsqrt %15 : vector<16x1xf32>
    %17 = vector.broadcast %16 : vector<16x1xf32> to vector<16x32xf32>
    %18 = arith.mulf %13, %17 : vector<16x32xf32>
    %c0_5 = arith.constant 0 : index
    %c0_6 = arith.constant 0 : index
    %19 = vector.load %arg2[%c0_5, %c0_6] : memref<1x32xf32, #tpu.memory_space<vmem>>, vector<1x32xf32>
    %20 = vector.broadcast %19 : vector<1x32xf32> to vector<16x32xf32>
    %21 = arith.mulf %18, %20 : vector<16x32xf32>
    %c0_7 = arith.constant 0 : index
    %c0_8 = arith.constant 0 : index
    %22 = vector.load %arg3[%c0_7, %c0_8] : memref<1x32xf32, #tpu.memory_space<vmem>>, vector<1x32xf32>
    %23 = vector.broadcast %22 : vector<1x32xf32> to vector<16x32xf32>
    %24 = arith.addf %21, %23 : vector<16x32xf32>
    %c0_9 = arith.constant 0 : index
    %c0_10 = arith.constant 0 : index
    %25 = vector.load %arg4[%c0_9, %c0_10] : memref<32x96xf32, #tpu.memory_space<vmem>>, vector<32x96xf32>
    %cst_11 = arith.constant dense<0.000000e+00> : vector<16x96xf32>
    %26 = tpu.matmul %24, %25, %cst_11 {dimension_numbers = #tpu.dot_dimension_numbers<[1], [0], [0], [1], [0, 0, 1, 1], [], []>} : vector<16x32xf32>, vector<32x96xf32>, vector<16x96xf32> -> vector<16x96xf32>
    %c0_12 = arith.constant 0 : index
    %c0_13 = arith.constant 0 : index
    %27 = vector.load %arg5[%c0_12, %c0_13] : memref<1x96xf32, #tpu.memory_space<vmem>>, vector<1x96xf32>
    %28 = vector.broadcast %27 : vector<1x96xf32> to vector<16x96xf32>
    %29 = arith.addf %26, %28 : vector<16x96xf32>
    %c0_14 = arith.constant 0 : index
    %c0_15 = arith.constant 0 : index
    %30 = vector.load %arg1[%c0_14, %c0_15] : memref<16x16xf32, #tpu.memory_space<vmem>>, vector<16x16xf32>
    %c0_16 = arith.constant 0 : index
    %c0_17 = arith.constant 0 : index
    %31 = vector.load %arg6[%c0_16, %c0_17] : memref<32x32xf32, #tpu.memory_space<vmem>>, vector<32x32xf32>
    %32 = vector.extract_strided_slice %29 {offsets = [0, 0], sizes = [16, 8], strides = [1, 1]} : vector<16x96xf32> to vector<16x8xf32>
    %33 = vector.extract_strided_slice %29 {offsets = [0, 32], sizes = [16, 8], strides = [1, 1]} : vector<16x96xf32> to vector<16x8xf32>
    %34 = vector.extract_strided_slice %29 {offsets = [0, 64], sizes = [16, 8], strides = [1, 1]} : vector<16x96xf32> to vector<16x8xf32>
    %cst_18 = arith.constant dense<0.000000e+00> : vector<16x16xf32>
    %35 = tpu.matmul %32, %33, %cst_18 {dimension_numbers = #tpu.dot_dimension_numbers<[1], [1], [0], [0], [0, 0, 1, 0], [], []>} : vector<16x8xf32>, vector<16x8xf32>, vector<16x16xf32> -> vector<16x16xf32>
    %36 = arith.addf %35, %30 : vector<16x16xf32>
    %cst_19 = arith.constant dense<0xFF800000> : vector<16xf32>
    %37 = vector.multi_reduction <maximumf>, %36, %cst_19 [1] : vector<16x16xf32> to vector<16xf32>
    %38 = vector.shape_cast %37 : vector<16xf32> to vector<16x1xf32>
    %39 = vector.broadcast %38 : vector<16x1xf32> to vector<16x16xf32>
    %40 = arith.subf %36, %39 : vector<16x16xf32>
    %41 = math.exp %40 : vector<16x16xf32>
    %cst_20 = arith.constant dense<0.000000e+00> : vector<16xf32>
    %42 = vector.multi_reduction <add>, %41, %cst_20 [1] : vector<16x16xf32> to vector<16xf32>
    %43 = vector.shape_cast %42 : vector<16xf32> to vector<16x1xf32>
    %44 = tpu.reciprocal %43 : vector<16x1xf32> -> vector<16x1xf32>
    %45 = vector.broadcast %44 : vector<16x1xf32> to vector<16x16xf32>
    %46 = arith.mulf %41, %45 : vector<16x16xf32>
    %47 = vector.extract_strided_slice %46 {offsets = [0, 0], sizes = [16, 8], strides = [1, 1]} : vector<16x16xf32> to vector<16x8xf32>
    %48 = vector.extract_strided_slice %46 {offsets = [0, 8], sizes = [16, 8], strides = [1, 1]} : vector<16x16xf32> to vector<16x8xf32>
    %49 = arith.addf %47, %48 : vector<16x8xf32>
    %cst_21 = arith.constant dense<0.000000e+00> : vector<16x8xf32>
    %50 = tpu.matmul %46, %34, %cst_21 {dimension_numbers = #tpu.dot_dimension_numbers<[1], [0], [0], [1], [0, 0, 1, 1], [], []>} : vector<16x16xf32>, vector<16x8xf32>, vector<16x8xf32> -> vector<16x8xf32>
    %51 = vector.extract_strided_slice %31 {offsets = [0, 0], sizes = [8, 32], strides = [1, 1]} : vector<32x32xf32> to vector<8x32xf32>
    %cst_22 = arith.constant dense<0.000000e+00> : vector<16x32xf32>
    %52 = tpu.matmul %50, %51, %cst_22 {dimension_numbers = #tpu.dot_dimension_numbers<[1], [0], [0], [1], [0, 0, 1, 1], [], []>} : vector<16x8xf32>, vector<8x32xf32>, vector<16x32xf32> -> vector<16x32xf32>
    %53 = vector.extract_strided_slice %29 {offsets = [0, 8], sizes = [16, 8], strides = [1, 1]} : vector<16x96xf32> to vector<16x8xf32>
    %54 = vector.extract_strided_slice %29 {offsets = [0, 40], sizes = [16, 8], strides = [1, 1]} : vector<16x96xf32> to vector<16x8xf32>
    %55 = vector.extract_strided_slice %29 {offsets = [0, 72], sizes = [16, 8], strides = [1, 1]} : vector<16x96xf32> to vector<16x8xf32>
    %cst_23 = arith.constant dense<0.000000e+00> : vector<16x16xf32>
    %56 = tpu.matmul %53, %54, %cst_23 {dimension_numbers = #tpu.dot_dimension_numbers<[1], [1], [0], [0], [0, 0, 1, 0], [], []>} : vector<16x8xf32>, vector<16x8xf32>, vector<16x16xf32> -> vector<16x16xf32>
    %57 = arith.addf %56, %30 : vector<16x16xf32>
    %cst_24 = arith.constant dense<0xFF800000> : vector<16xf32>
    %58 = vector.multi_reduction <maximumf>, %57, %cst_24 [1] : vector<16x16xf32> to vector<16xf32>
    %59 = vector.shape_cast %58 : vector<16xf32> to vector<16x1xf32>
    %60 = vector.broadcast %59 : vector<16x1xf32> to vector<16x16xf32>
    %61 = arith.subf %57, %60 : vector<16x16xf32>
    %62 = math.exp %61 : vector<16x16xf32>
    %cst_25 = arith.constant dense<0.000000e+00> : vector<16xf32>
    %63 = vector.multi_reduction <add>, %62, %cst_25 [1] : vector<16x16xf32> to vector<16xf32>
    %64 = vector.shape_cast %63 : vector<16xf32> to vector<16x1xf32>
    %65 = tpu.reciprocal %64 : vector<16x1xf32> -> vector<16x1xf32>
    %66 = vector.broadcast %65 : vector<16x1xf32> to vector<16x16xf32>
    %67 = arith.mulf %62, %66 : vector<16x16xf32>
    %68 = vector.extract_strided_slice %67 {offsets = [0, 0], sizes = [16, 8], strides = [1, 1]} : vector<16x16xf32> to vector<16x8xf32>
    %69 = vector.extract_strided_slice %67 {offsets = [0, 8], sizes = [16, 8], strides = [1, 1]} : vector<16x16xf32> to vector<16x8xf32>
    %70 = arith.addf %68, %69 : vector<16x8xf32>
    %cst_26 = arith.constant dense<0.000000e+00> : vector<16x8xf32>
    %71 = tpu.matmul %67, %55, %cst_26 {dimension_numbers = #tpu.dot_dimension_numbers<[1], [0], [0], [1], [0, 0, 1, 1], [], []>} : vector<16x16xf32>, vector<16x8xf32>, vector<16x8xf32> -> vector<16x8xf32>
    %72 = vector.extract_strided_slice %31 {offsets = [8, 0], sizes = [8, 32], strides = [1, 1]} : vector<32x32xf32> to vector<8x32xf32>
    %cst_27 = arith.constant dense<0.000000e+00> : vector<16x32xf32>
    %73 = tpu.matmul %71, %72, %cst_27 {dimension_numbers = #tpu.dot_dimension_numbers<[1], [0], [0], [1], [0, 0, 1, 1], [], []>} : vector<16x8xf32>, vector<8x32xf32>, vector<16x32xf32> -> vector<16x32xf32>
    %74 = arith.addf %52, %73 : vector<16x32xf32>
    %75 = vector.extract_strided_slice %29 {offsets = [0, 16], sizes = [16, 8], strides = [1, 1]} : vector<16x96xf32> to vector<16x8xf32>
    %76 = vector.extract_strided_slice %29 {offsets = [0, 48], sizes = [16, 8], strides = [1, 1]} : vector<16x96xf32> to vector<16x8xf32>
    %77 = vector.extract_strided_slice %29 {offsets = [0, 80], sizes = [16, 8], strides = [1, 1]} : vector<16x96xf32> to vector<16x8xf32>
    %cst_28 = arith.constant dense<0.000000e+00> : vector<16x16xf32>
    %78 = tpu.matmul %75, %76, %cst_28 {dimension_numbers = #tpu.dot_dimension_numbers<[1], [1], [0], [0], [0, 0, 1, 0], [], []>} : vector<16x8xf32>, vector<16x8xf32>, vector<16x16xf32> -> vector<16x16xf32>
    %79 = arith.addf %78, %30 : vector<16x16xf32>
    %cst_29 = arith.constant dense<0xFF800000> : vector<16xf32>
    %80 = vector.multi_reduction <maximumf>, %79, %cst_29 [1] : vector<16x16xf32> to vector<16xf32>
    %81 = vector.shape_cast %80 : vector<16xf32> to vector<16x1xf32>
    %82 = vector.broadcast %81 : vector<16x1xf32> to vector<16x16xf32>
    %83 = arith.subf %79, %82 : vector<16x16xf32>
    %84 = math.exp %83 : vector<16x16xf32>
    %cst_30 = arith.constant dense<0.000000e+00> : vector<16xf32>
    %85 = vector.multi_reduction <add>, %84, %cst_30 [1] : vector<16x16xf32> to vector<16xf32>
    %86 = vector.shape_cast %85 : vector<16xf32> to vector<16x1xf32>
    %87 = tpu.reciprocal %86 : vector<16x1xf32> -> vector<16x1xf32>
    %88 = vector.broadcast %87 : vector<16x1xf32> to vector<16x16xf32>
    %89 = arith.mulf %84, %88 : vector<16x16xf32>
    %90 = vector.extract_strided_slice %89 {offsets = [0, 0], sizes = [16, 8], strides = [1, 1]} : vector<16x16xf32> to vector<16x8xf32>
    %91 = vector.extract_strided_slice %89 {offsets = [0, 8], sizes = [16, 8], strides = [1, 1]} : vector<16x16xf32> to vector<16x8xf32>
    %92 = arith.addf %90, %91 : vector<16x8xf32>
    %cst_31 = arith.constant dense<0.000000e+00> : vector<16x8xf32>
    %93 = tpu.matmul %89, %77, %cst_31 {dimension_numbers = #tpu.dot_dimension_numbers<[1], [0], [0], [1], [0, 0, 1, 1], [], []>} : vector<16x16xf32>, vector<16x8xf32>, vector<16x8xf32> -> vector<16x8xf32>
    %94 = vector.extract_strided_slice %31 {offsets = [16, 0], sizes = [8, 32], strides = [1, 1]} : vector<32x32xf32> to vector<8x32xf32>
    %cst_32 = arith.constant dense<0.000000e+00> : vector<16x32xf32>
    %95 = tpu.matmul %93, %94, %cst_32 {dimension_numbers = #tpu.dot_dimension_numbers<[1], [0], [0], [1], [0, 0, 1, 1], [], []>} : vector<16x8xf32>, vector<8x32xf32>, vector<16x32xf32> -> vector<16x32xf32>
    %96 = arith.addf %74, %95 : vector<16x32xf32>
    %97 = vector.extract_strided_slice %29 {offsets = [0, 24], sizes = [16, 8], strides = [1, 1]} : vector<16x96xf32> to vector<16x8xf32>
    %98 = vector.extract_strided_slice %29 {offsets = [0, 56], sizes = [16, 8], strides = [1, 1]} : vector<16x96xf32> to vector<16x8xf32>
    %99 = vector.extract_strided_slice %29 {offsets = [0, 88], sizes = [16, 8], strides = [1, 1]} : vector<16x96xf32> to vector<16x8xf32>
    %cst_33 = arith.constant dense<0.000000e+00> : vector<16x16xf32>
    %100 = tpu.matmul %97, %98, %cst_33 {dimension_numbers = #tpu.dot_dimension_numbers<[1], [1], [0], [0], [0, 0, 1, 0], [], []>} : vector<16x8xf32>, vector<16x8xf32>, vector<16x16xf32> -> vector<16x16xf32>
    %101 = arith.addf %100, %30 : vector<16x16xf32>
    %cst_34 = arith.constant dense<0xFF800000> : vector<16xf32>
    %102 = vector.multi_reduction <maximumf>, %101, %cst_34 [1] : vector<16x16xf32> to vector<16xf32>
    %103 = vector.shape_cast %102 : vector<16xf32> to vector<16x1xf32>
    %104 = vector.broadcast %103 : vector<16x1xf32> to vector<16x16xf32>
    %105 = arith.subf %101, %104 : vector<16x16xf32>
    %106 = math.exp %105 : vector<16x16xf32>
    %cst_35 = arith.constant dense<0.000000e+00> : vector<16xf32>
    %107 = vector.multi_reduction <add>, %106, %cst_35 [1] : vector<16x16xf32> to vector<16xf32>
    %108 = vector.shape_cast %107 : vector<16xf32> to vector<16x1xf32>
    %109 = tpu.reciprocal %108 : vector<16x1xf32> -> vector<16x1xf32>
    %110 = vector.broadcast %109 : vector<16x1xf32> to vector<16x16xf32>
    %111 = arith.mulf %106, %110 : vector<16x16xf32>
    %112 = vector.extract_strided_slice %111 {offsets = [0, 0], sizes = [16, 8], strides = [1, 1]} : vector<16x16xf32> to vector<16x8xf32>
    %113 = vector.extract_strided_slice %111 {offsets = [0, 8], sizes = [16, 8], strides = [1, 1]} : vector<16x16xf32> to vector<16x8xf32>
    %114 = arith.addf %112, %113 : vector<16x8xf32>
    %cst_36 = arith.constant dense<0.000000e+00> : vector<16x8xf32>
    %115 = tpu.matmul %111, %99, %cst_36 {dimension_numbers = #tpu.dot_dimension_numbers<[1], [0], [0], [1], [0, 0, 1, 1], [], []>} : vector<16x16xf32>, vector<16x8xf32>, vector<16x8xf32> -> vector<16x8xf32>
    %116 = vector.extract_strided_slice %31 {offsets = [24, 0], sizes = [8, 32], strides = [1, 1]} : vector<32x32xf32> to vector<8x32xf32>
    %cst_37 = arith.constant dense<0.000000e+00> : vector<16x32xf32>
    %117 = tpu.matmul %115, %116, %cst_37 {dimension_numbers = #tpu.dot_dimension_numbers<[1], [0], [0], [1], [0, 0, 1, 1], [], []>} : vector<16x8xf32>, vector<8x32xf32>, vector<16x32xf32> -> vector<16x32xf32>
    %118 = arith.addf %96, %117 : vector<16x32xf32>
    %c0_38 = arith.constant 0 : index
    %c0_39 = arith.constant 0 : index
    %119 = vector.load %arg7[%c0_38, %c0_39] : memref<1x32xf32, #tpu.memory_space<vmem>>, vector<1x32xf32>
    %120 = vector.broadcast %119 : vector<1x32xf32> to vector<16x32xf32>
    %121 = arith.addf %118, %120 : vector<16x32xf32>
    %122 = arith.addf %121, %0 : vector<16x32xf32>
    %c0_40 = arith.constant 0 : index
    %c0_41 = arith.constant 0 : index
    %123 = vector.load %arg8[%c0_40, %c0_41] : memref<16x32xf32, #tpu.memory_space<vmem>>, vector<16x32xf32>
    tpu.vector_store %arg8[%c0_40, %c0_41], %122 {strides = array<i32>} : memref<16x32xf32, #tpu.memory_space<vmem>>, vector<16x32xf32>,
    %124 = tpu.concatenate %49, %70, %92, %114 in 1 : vector<16x8xf32>, vector<16x8xf32>, vector<16x8xf32>, vector<16x8xf32> -> vector<16x32xf32>
    %c0_42 = arith.constant 0 : index
    %c0_43 = arith.constant 0 : index
    %125 = vector.load %arg9[%c0_42, %c0_43] : memref<16x32xf32, #tpu.memory_space<vmem>>, vector<16x32xf32>
    tpu.vector_store %arg9[%c0_42, %c0_43], %124 {strides = array<i32>} : memref<16x32xf32, #tpu.memory_space<vmem>>, vector<16x32xf32>,
    return
  }
}

</mosaic_0001>

<bundles_post_ra>
// kernel: tpu_custom_call.1
= control target key start
LH: loop header
LB: loop body
LE: loop exit
PB: predicated region body
PF: predicated region fallthrough
CT: control target
= control target key end

     0   :  { %15 = vsyncpa [#allocation3], 0  ;;  %s1485_s0 = inlined_call_operand.hbm [shape: f32[16,32], index: 0, kind: input, shape index: {}]   ;;  %s1486_s1 = inlined_call_operand.hbm [shape: f32[16,16], index: 1, kind: input, shape index: {}]   ;;  %s1487_s2 = inlined_call_operand.vmem [shape: f32[1,32], index: 2, kind: input, shape index: {}]   ;;  %s1488_s3 = inlined_call_operand.vmem [shape: f32[1,32], index: 3, kind: input, shape index: {}]   ;;  %s1489_s4 = inlined_call_operand.hbm [shape: f32[32,96], index: 4, kind: input, shape index: {}]   ;;  %s1490_s5 = inlined_call_operand.vmem [shape: f32[1,96], index: 5, kind: input, shape index: {}]   ;;  %s1491_s6 = inlined_call_operand.hbm [shape: f32[32,32], index: 6, kind: input, shape index: {}]   ;;  %s1492_s7 = inlined_call_operand.vmem [shape: f32[1,32], index: 7, kind: input, shape index: {}]   ;;  %s1493_s8 = inlined_call_operand.hbm [shape: f32[16,32], index: 8, kind: output, shape index: {0}]   ;;  %s1494_s9 = inlined_call_operand.hbm [shape: f32[16,32], index: 9, kind: output, shape index: {1}]  }
   0x1   :  { %16 = vsyncpa [#allocation6], 0 }
   0x2   :  { %17 = vsyncpa [#allocation9], 0 }
   0x3   :  { %18 = vsyncpa [#allocation4], 0 }
   0x4   :  { %19 = vsyncpa [#allocation12], 0  ;;  %s37_s11 = sshll.u32 %s1486_s1, 4  ;;  %s1201_s12 = smov [#allocation5]   ;;  %s38_s11 = int_to_ptr.hbm [resolvable:$true] %s37_s11 }
   0x5   :  { %s39_s13 = sshll.u32 %s1201_s12, 4  ;;  %s24_s16 = sshll.u32 %s1485_s0, 4  ;;  %s40_s13 = int_to_ptr.vmem [resolvable:$true] %s39_s13  ;;  %s25_s16 = int_to_ptr.hbm [resolvable:$true] %s24_s16 }
   0x6   :  { %s1202_s17 = smov 128   ;;  %s1203_s18 = smov 8  }
   0x7   :  { %45 = dma.hbm_to_vmem [thread:$0]  %s38_s11, 256, %s40_s13, [#allocation6], %s1202_s17, %s1202_s17, %s1203_s18  }
   0x8   :  { %s1204_s19 = smov [#allocation2]   ;;  %s54_s1 = sshll.u32 %s1489_s4, 4  ;;  %s55_s1 = int_to_ptr.hbm [resolvable:$true] %s54_s1 }
   0x9   :  { %s26_s20 = sshll.u32 %s1204_s19, 4  ;;  %s69_s24 = sshll.u32 %s1491_s6, 4  ;;  %s27_s20 = int_to_ptr.vmem [resolvable:$true] %s26_s20  ;;  %s70_s24 = int_to_ptr.hbm [resolvable:$true] %s69_s24 }
   0xa   :  { %32 = dma.hbm_to_vmem [thread:$0]  %s25_s16, 256, %s27_s20, [#allocation3], %s1202_s17, %s1202_s17, %s1203_s18  }
   0xb   :  { %s1205_s25 = smov [#allocation7]   ;;  %s1206_s27 = smov [#allocation8]  }
   0xc   :  { %s56_s26 = sshll.u32 %s1205_s25, 4  ;;  %s71_s4 = sshll.u32 %s1206_s27, 4  ;;  %s57_s26 = int_to_ptr.vmem [resolvable:$true] %s56_s26  ;;  %s72_s4 = int_to_ptr.vmem [resolvable:$true] %s71_s4 }
   0xd   :  { %62 = dma.hbm_to_vmem [thread:$0]  %s55_s1, 512, %s57_s26, [#allocation6], %s1202_s17, %s1202_s17, %s1203_s18  }
   0xe   :  { %77 = dma.hbm_to_vmem [thread:$0]  %s70_s24, 512, %s72_s4, [#allocation9], %s1202_s17, %s1202_s17, %s1203_s18  }
   0xf   :  { %1191 = dma.done.wait [#allocation3], 256  }
  0x10   :  { %1192 = vsyncadd [#allocation3], 4294967040 }
  0x11   :  { %1193 = dma.done.wait [#allocation6], 768  }
  0x12   :  { %1194 = vsyncadd [#allocation6], 4294966528 }
  0x13   :  { %1195 = dma.done.wait [#allocation9], 512  }
  0x14   :  { %1196 = vsyncadd [#allocation9], 4294966784  ;;  %vm98_vm0 = vcmask 261120   ;;  %v1297_v0 = vld [vmem:[#allocation2] sm:$0xff]  ;;  %v1301_v2 = vld [vmem:[#allocation2 + $0x8] sm:$0xff]  ;;  %v1207_v4 = vmov 32.0  }
  0x15   :  { %v99_v1 = vsel %vm98_vm0, %v1297_v0, 0.0  ;;  %v102_v3 = vsel %vm98_vm0, %v1301_v2, 0.0  ;;  %1009 = vrcp.f32 %v1207_v4  ;;  %v165_v21 = vld [vmem:[#allocation7 + $0x18] sm:$0xff]  ;;  %v164_v22 = vld [vmem:[#allocation7 + $0x10] sm:$0xff]  ;;  %v163_v23 = vld [vmem:[#allocation7 + $0x8] sm:$0xff]  ;;  %vm211_vm8 = vcmask 64512  }
  0x16   :  { %100 = vadd.xlane.f32.xlu0 %v99_v1  ;;  %188 = vmatpush.msra.mxu0 %v165_v21  ;;  %v162_v24 = vld [vmem:[#allocation7] sm:$0xff]  ;;  %v1324_v60 = vld [vmem:[#allocation5] sm:$0xff]  ;;  %vm243_vm9 = vcmask 130048   ;;  %v1328_v1 = vld [vmem:[#allocation5 + $0x8] sm:$0xff]  ;;  %s1210_s11 = smov 88   ;;  %s1211_s12 = smov 120  }
  0x17   :  { %v1005_v39 = vld [vmem:[%s1487_s2] ss:$0 sm:$0xff]  ;;  %s1212_s13 = smov 80   ;;  %s1213_s14 = smov 112  }
  0x18   :  { %189 = vmatpush.msra.mxu0 %v164_v22  ;;  %v1006_v43 = vld [vmem:[%s1488_s3] ss:$0 sm:$0xff]  ;;  %s1208_s3 = smov 96   ;;  %s1214_s15 = smov 104  }
  0x19   :  { %v1007_v54 = vld [vmem:[%s1490_s5] ss:$0 sm:$0xff]  ;;  %s1209_s5 = smov 64   ;;  %s1215_s16 = smov 72  }
  0x1a   :  { %190 = vmatpush.msra.mxu0 %v163_v23  ;;  %v201_v21 = vld [vmem:[#allocation8] sm:$0xff]  ;;  %s1216_s19 = smov 56   ;;  %s1217_s20 = smov 48  }
  0x1b   :  { %v1010_v5 = vpop.eup %1009  ;;  %s1218_s21 = smov 40   ;;  %s1219_s22 = smov 16  }
  0x1c   :  { %v106_v6 = vmul.f32 32.0, %v1010_v5  ;;  %vm110_vm1 = vweird.f32 %v1010_v5  ;;  %191 = vmatpush.msra.mxu0 %v162_v24  ;;  %s1220_s1 = smov 24   ;;  %s1221_s0 = smov [#allocation11]  }
  0x1d   :  { %s905_s23 = sshll.u32 %s1221_s0, 4  ;;  %s907_s26 = sshll.u32 %s1494_s9, 4  ;;  %s906_s23 = int_to_ptr.vmem [resolvable:$true] %s905_s23  ;;  %s908_s26 = int_to_ptr.hbm [resolvable:$true] %s907_s26 }
  0x1e   :  { %103 = vadd.xlane.f32.xlu0 %v102_v3  ;;  %v107_v7 = vsub.f32 1.0, %v106_v6  ;;  %s1222_s4 = smov [#allocation10]   ;;  %s894_s30 = sshll.u32 %s1493_s8, 4  ;;  %s895_s30 = int_to_ptr.hbm [resolvable:$true] %s894_s30 }
  0x1f   :  { %s892_s6 = sshll.u32 %s1222_s4, 4  ;;  %s893_s6 = int_to_ptr.vmem [resolvable:$true] %s892_s6 }
  0x20   :  { %v108_v8 = vmul.f32 %v1010_v5, %v107_v7 }
  0x22   :  { %v109_v9 = vadd.f32 %v1010_v5, %v108_v8 }
  0x24   :  { %v111_v10 = vsel %vm110_vm1, %v1010_v5, %v109_v9 }
  0x89   :  { %v101_v11 = vpop.xlane.xlu0 %100 }
  0x8a   :  { %v112_v12 = vmul.f32 %v111_v10, %v101_v11 }
  0x8c   :  { %v114_v13 = vsub.f32 %v1297_v0, %v112_v12 }
  0x8e   :  { %v116_v14 = vmul.f32 %v114_v13, %v114_v13 }
  0x90   :  { %v118_v15 = vsel %vm98_vm0, %v116_v14, 0.0 }
  0x91   :  { %119 = vadd.xlane.f32.xlu1 %v118_v15  ;;  %v104_v16 = vpop.xlane.xlu0 %103 }
  0x92   :  { %v113_v17 = vmul.f32 %v111_v10, %v104_v16 }
  0x94   :  { %v115_v18 = vsub.f32 %v1301_v2, %v113_v17 }
  0x96   :  { %v117_v19 = vmul.f32 %v115_v18, %v115_v18 }
  0x98   :  { %v121_v20 = vsel %vm98_vm0, %v117_v19, 0.0 }
  0x99   :  { %122 = vadd.xlane.f32.xlu1 %v121_v20 }
 0x104   :  { %v120_v25 = vpop.xlane.xlu1 %119 }
 0x105   :  { %v124_v26 = vmul.f32 %v120_v25, %v111_v10 }
 0x107   :  { %v126_v27 = vadd.f32 1e-12, %v124_v26 }
 0x109   :  { %1011 = vrsqrt.f32 %v126_v27  ;;  %vm134_vm3 = vweird.f32 %v126_v27 }
 0x10c   :  { %v123_v28 = vpop.xlane.xlu1 %122 }
 0x10d   :  { %v125_v29 = vmul.f32 %v123_v28, %v111_v10 }
 0x10f   :  { %v1012_v30 = vpop.eup %1011  ;;  %v127_v31 = vadd.f32 1e-12, %v125_v29 }
 0x110   :  { %v129_v32 = vmul.f32 %v1012_v30, %v126_v27  ;;  %vm135_vm2 = vweird.f32 %v1012_v30 }
 0x111   :  { %1013 = vrsqrt.f32 %v127_v31  ;;  %vm136_vm4 = vmor %vm134_vm3, %vm135_vm2  ;;  %vm144_vm6 = vweird.f32 %v127_v31 }
 0x112   :  { %v130_v33 = vmul.f32 %v1012_v30, %v129_v32 }
 0x114   :  { %v131_v34 = vmul.f32 0.5, %v130_v33 }
 0x116   :  { %v132_v35 = vsub.f32 1.5, %v131_v34 }
 0x117   :  { %v1014_v36 = vpop.eup %1013 }
 0x118   :  { %v133_v37 = vmul.f32 %v1012_v30, %v132_v35  ;;  %v139_v38 = vmul.f32 %v1014_v36, %v127_v31  ;;  %vm145_vm5 = vweird.f32 %v1014_v36 }
 0x119   :  { %vm146_vm7 = vmor %vm144_vm6, %vm145_vm5 }
 0x11a   :  { %v137_v40 = vsel %vm136_vm4, %v1012_v30, %v133_v37  ;;  %v140_v41 = vmul.f32 %v1014_v36, %v139_v38 }
 0x11b   :  { %v148_v42 = vmul.f32 %v137_v40, %v114_v13 }
 0x11c   :  { %v141_v44 = vmul.f32 0.5, %v140_v41 }
 0x11d   :  { %v154_v45 = vmul.f32 %v1005_v39, %v148_v42 }
 0x11e   :  { %v142_v46 = vsub.f32 1.5, %v141_v44 }
 0x11f   :  { %v160_v47 = vadd.f32 %v1006_v43, %v154_v45 }
 0x120   :  { %v143_v48 = vmul.f32 %v1014_v36, %v142_v46 }
 0x121   :  { %927 = vmatmul.msk.f32.vlgmr.msra.gmra.mxu0 %vm98_vm0, %v160_v47 }
 0x122   :  { %v147_v49 = vsel %vm146_vm7, %v1014_v36, %v143_v48 }
 0x123   :  { %v149_v50 = vmul.f32 %v147_v49, %v115_v18 }
 0x125   :  { %v155_v51 = vmul.f32 %v1005_v39, %v149_v50 }
 0x127   :  { %v161_v52 = vadd.f32 %v1006_v43, %v155_v51 }
 0x129   :  { %928 = vmatmul.msk.f32.gmra.mxu0 %vm98_vm0, %v161_v52 }
 0x19e   :  { %v193_v53 = vpop.f32.mrf.mxu0 }
 0x19f   :  { %v194_v57 = vadd.f32 %v1007_v54, %v193_v53 }
 0x1a6   :  { %v196_v55 = vpop.f32.mrf.mxu0 }
 0x1a7   :  { %v197_v56 = vadd.f32 %v1007_v54, %v196_v55 }
 0x1a9   :  { %209 = vrot.lane.b32.xlu2 %v197_v56, %s1208_s3  ;;  %v1332_v6 = vpack.i.bf16 %v194_v57, %v197_v56 }
 0x1b1   :  { %207 = vrot.lane.b32.xlu2 %v194_v57, %s1208_s3 }
 0x203   :  { %v210_v58 = vpop.permute.xlu2 %209 }
 0x204   :  { %929 = vmatpush.xpose.msk.msra.mxu1 %vm211_vm8, %v210_v58 }
 0x20b   :  { %v208_v59 = vpop.permute.xlu2 %207 }
 0x20c   :  { %930 = vmatpush.xpose.msk.msra.mxu1 %vm211_vm8, %v208_v59 }
 0x20f   :  { %931 = vmatmul.msk.f32.vlgmr.msra.gmra.mxu1 %vm211_vm8, %v194_v57 }
 0x210   :  { %515 = vmatpush.msrb.mxu1 %v201_v21 }
 0x217   :  { %932 = vmatmul.msk.f32.gmra.mxu1 %vm211_vm8, %v197_v56 }
 0x28c   :  { %v237_v61 = vpop.f32.mrf.mxu1 }
 0x28d   :  { %v238_v62 = vadd.f32 %v237_v61, %v1324_v60 }
 0x28f   :  { %v244_v63 = vsel %vm243_vm9, %v238_v62, -inf }
 0x290   :  { %245 = vmax.xlane.f32.xlu0 %v244_v63 }
 0x294   :  { %v240_v3 = vpop.f32.mrf.mxu1 }
 0x295   :  { %v241_v4 = vadd.f32 %v240_v3, %v1328_v1 }
 0x297   :  { %v247_v5 = vsel %vm243_vm9, %v241_v4, -inf }
 0x298   :  { %248 = vmax.xlane.f32.xlu1 %v247_v5 }
 0x2b1   :  { %986 = vrot.lane.b32.xlu1 %v1332_v6, %s1209_s5 }
 0x2b9   :  { %339 = vrot.lane.b32.xlu1 %v194_v57, %s1210_s11 }
 0x2c1   :  { %337 = vrot.lane.b32.xlu1 %v197_v56, %s1211_s12 }
 0x2c9   :  { %527 = vrot.lane.b32.xlu1 %v194_v57, %s1212_s13 }
 0x2d1   :  { %523 = vrot.lane.b32.xlu1 %v194_v57, %s1213_s14 }
 0x2d9   :  { %525 = vrot.lane.b32.xlu1 %v197_v56, %s1213_s14 }
 0x303   :  { %v246_v7 = vpop.xlane.xlu0 %245 }
 0x304   :  { %v250_v8 = vsub.f32 %v238_v62, %v246_v7 }
 0x306   :  { %v252_v9 = vmul.f32 1.442695, %v250_v8 }
 0x308   :  { %1015 = vpow2.f32 %v252_v9 }
 0x30b   :  { %v249_v10 = vpop.xlane.xlu1 %248 }
 0x30c   :  { %v251_v11 = vsub.f32 %v241_v4, %v249_v10 }
 0x30e   :  { %v1016_v12 = vpop.eup %1015  ;;  %v254_v13 = vmul.f32 1.442695, %v251_v11 }
 0x30f   :  { %v256_v14 = vsel %vm243_vm9, %v1016_v12, 0.0 }
 0x310   :  { %1017 = vpow2.f32 %v254_v13  ;;  %257 = vadd.xlane.f32.xlu2 %v256_v14 }
 0x316   :  { %v1018_v15 = vpop.eup %1017 }
 0x317   :  { %v259_v16 = vsel %vm243_vm9, %v1018_v15, 0.0 }
 0x318   :  { %260 = vadd.xlane.f32.xlu0 %v259_v16 }
 0x323   :  { %v987_v17 = vpop.permute.xlu1 %986 }
 0x324   :  { %v988_v18 = vunpack.i.l.bf16 %v987_v17  ;;  %v989_v19 = vunpack.i.h.bf16 %v987_v17 }
 0x326   :  { %326 = vmatpush.msrb.mxu0 %v988_v18  ;;  %961 = vmatpush.msra.mxu2 %v988_v18 }
 0x328   :  { %327 = vmatpush.msrb.mxu0 %v989_v19  ;;  %962 = vmatpush.msra.mxu2 %v989_v19 }
 0x329   :  { %529 = vrot.lane.b32.xlu2 %v197_v56, %s1212_s13 }
 0x32b   :  { %v340_v32 = vpop.permute.xlu1 %339 }
 0x32c   :  { %341 = vrot.lane.b32.xlu0 %v197_v56, %s1210_s11 }
 0x331   :  { %686 = vrot.lane.b32.xlu2 %v197_v56, %s1214_s15 }
 0x333   :  { %v338_v45 = vpop.permute.xlu1 %337 }
 0x334   :  { %335 = vrot.lane.b32.xlu0 %v194_v57, %s1211_s12 }
 0x33b   :  { %v528_v50 = vpop.permute.xlu1 %527 }
 0x33c   :  { %690 = vrot.lane.b32.xlu0 %v197_v56, %s1215_s16 }
 0x343   :  { %v524_v52 = vpop.permute.xlu1 %523 }
 0x344   :  { %688 = vrot.lane.b32.xlu0 %v194_v57, %s1215_s16 }
 0x34b   :  { %v526_v54 = vpop.permute.xlu1 %525 }
 0x34c   :  { %684 = vrot.lane.b32.xlu0 %v194_v57, %s1214_s15 }
 0x383   :  { %v258_v20 = vpop.xlane.xlu2 %257 }
 0x384   :  { %1019 = vrcp.f32 %v258_v20  ;;  %v273_v26 = vand.u32 2147483648, %v258_v20  ;;  %v271_v28 = vand.u32 2147483647, %v258_v20  ;;  %vm267_vm11 = vweird.f32 %v258_v20 }
 0x386   :  { %v274_v31 = vor.u32 1.1754944e-38, %v273_v26  ;;  %vm272_vm13 = vcmp.eq.f32.partialorder %v271_v28, 8.507059e+37 }
 0x38a   :  { %v1020_v22 = vpop.eup %1019 }
 0x38b   :  { %v263_v23 = vmul.f32 %v1020_v22, %v258_v20  ;;  %v261_v24 = vpop.xlane.xlu0 %260  ;;  %vm268_vm10 = vweird.f32 %v1020_v22  ;;  %v530_v48 = vpop.permute.xlu2 %529 }
 0x38c   :  { %1021 = vrcp.f32 %v261_v24  ;;  %vm269_vm12 = vmor %vm267_vm11, %vm268_vm10  ;;  %v287_v38 = vand.u32 2147483648, %v261_v24  ;;  %v285_v40 = vand.u32 2147483647, %v261_v24  ;;  %vm281_vm15 = vweird.f32 %v261_v24 }
 0x38d   :  { %v264_v25 = vsub.f32 1.0, %v263_v23 }
 0x38e   :  { %v288_v42 = vor.u32 1.1754944e-38, %v287_v38  ;;  %vm286_vm2 = vcmp.eq.f32.partialorder %v285_v40, 8.507059e+37 }
 0x38f   :  { %v265_v27 = vmul.f32 %v1020_v22, %v264_v25 }
 0x391   :  { %v266_v29 = vadd.f32 %v1020_v22, %v265_v27 }
 0x392   :  { %v1022_v30 = vpop.eup %1021 }
 0x393   :  { %v277_v33 = vmul.f32 %v1022_v30, %v261_v24  ;;  %v270_v34 = vsel %vm269_vm12, %v1020_v22, %v266_v29  ;;  %vm282_vm14 = vweird.f32 %v1022_v30  ;;  %v687_v62 = vpop.permute.xlu2 %686 }
 0x394   :  { %v275_v35 = vsel %vm272_vm13, %v274_v31, %v270_v34  ;;  %vm283_vm1 = vmor %vm281_vm15, %vm282_vm14 }
 0x395   :  { %v278_v36 = vsub.f32 1.0, %v277_v33  ;;  %v1341_v37 = vmul.f32 %v1016_v12, %v275_v35 }
 0x397   :  { %v279_v39 = vmul.f32 %v1022_v30, %v278_v36  ;;  %933 = vmatmul.msk.f32.vlgmr.msrb.gmra.mxu0 %vm243_vm9, %v1341_v37 }
 0x399   :  { %v280_v41 = vadd.f32 %v1022_v30, %v279_v39 }
 0x39b   :  { %v284_v43 = vsel %vm283_vm1, %v1022_v30, %v280_v41 }
 0x39c   :  { %v289_v44 = vsel %vm286_vm2, %v288_v42, %v284_v43 }
 0x39d   :  { %v1345_v46 = vmul.f32 %v1018_v15, %v289_v44 }
 0x39e   :  { %v342_v47 = vpop.permute.xlu0 %341 }
 0x39f   :  { %934 = vmatmul.msk.f32.vlgmr.msra.gmra.mxu2 %vm243_vm9, %v1345_v46  ;;  %935 = vmatpush.xpose.msk.msra.mxu3 %vm211_vm8, %v342_v47 }
 0x3a3   :  { %936 = vmatpush.xpose.msk.msra.mxu3 %vm211_vm8, %v340_v32 }
 0x3a6   :  { %v336_v49 = vpop.permute.xlu0 %335 }
 0x3a7   :  { %945 = vmatpush.xpose.msk.msrb.mxu3 %vm211_vm8, %v530_v48 }
 0x3a8   :  { %937 = vmatmul.msk.f32.vlgmr.msra.gmra.mxu3 %vm211_vm8, %v336_v49 }
 0x3ab   :  { %946 = vmatpush.xpose.msk.msrb.mxu3 %vm211_vm8, %v528_v50 }
 0x3ae   :  { %v691_v51 = vpop.permute.xlu0 %690 }
 0x3af   :  { %953 = vmatpush.xpose.msk.msra.mxu1 %vm211_vm8, %v691_v51 }
 0x3b0   :  { %938 = vmatmul.msk.f32.gmra.mxu3 %vm211_vm8, %v338_v45 }
 0x3b6   :  { %v689_v53 = vpop.permute.xlu0 %688 }
 0x3b7   :  { %954 = vmatpush.xpose.msk.msra.mxu1 %vm211_vm8, %v689_v53 }
 0x3b8   :  { %947 = vmatmul.msk.f32.vlgmr.msrb.gmra.mxu3 %vm211_vm8, %v524_v52 }
 0x3be   :  { %v685_v57 = vpop.permute.xlu0 %684 }
 0x3c0   :  { %948 = vmatmul.msk.f32.gmra.mxu3 %vm211_vm8, %v526_v54 }
 0x414   :  { %v329_v55 = vpop.f32.mrf.mxu0 }
 0x415   :  { %943 = vmatmul.msk.f32.vlgmr.msrb.gmra.mxu1 %vm211_vm8, %v329_v55 }
 0x422   :  { %v332_v56 = vpop.f32.mrf.mxu2 }
 0x423   :  { %944 = vmatmul.msk.f32.gmra.mxu1 %vm211_vm8, %v332_v56 }
 0x42b   :  { %v368_v58 = vpop.f32.mrf.mxu3  ;;  %955 = vmatmul.msk.f32.vlgmr.msra.gmra.mxu1 %vm211_vm8, %v685_v57 }
 0x42c   :  { %v369_v59 = vadd.f32 %v368_v58, %v1324_v60 }
 0x42e   :  { %v374_v61 = vsel %vm243_vm9, %v369_v59, -inf }
 0x42f   :  { %375 = vmax.xlane.f32.xlu0 %v374_v61 }
 0x433   :  { %v371_v63 = vpop.f32.mrf.mxu3  ;;  %956 = vmatmul.msk.f32.gmra.mxu1 %vm211_vm8, %v687_v62 }
 0x434   :  { %v372_v3 = vadd.f32 %v371_v63, %v1328_v1 }
 0x436   :  { %v377_v4 = vsel %vm243_vm9, %v372_v3, -inf }
 0x437   :  { %378 = vmax.xlane.f32.xlu1 %v377_v4 }
 0x43b   :  { %v556_v5 = vpop.f32.mrf.mxu3 }
 0x43c   :  { %v557_v7 = vadd.f32 %v556_v5, %v1324_v60 }
 0x43e   :  { %v562_v8 = vsel %vm243_vm9, %v557_v7, -inf }
 0x43f   :  { %563 = vmax.xlane.f32.xlu0 %v562_v8 }
 0x443   :  { %v559_v9 = vpop.f32.mrf.mxu3 }
 0x444   :  { %v560_v10 = vadd.f32 %v559_v9, %v1328_v1 }
 0x446   :  { %v565_v11 = vsel %vm243_vm9, %v560_v10, -inf }
 0x447   :  { %566 = vmax.xlane.f32.xlu1 %v565_v11 }
 0x492   :  { %v1371_v12 = vpop.f32.mrf.mxu1 }
 0x4a0   :  { %v1373_v13 = vpop.f32.mrf.mxu1 }
 0x4a2   :  { %v376_v14 = vpop.xlane.xlu0 %375 }
 0x4a3   :  { %v380_v15 = vsub.f32 %v369_v59, %v376_v14 }
 0x4a5   :  { %v382_v16 = vmul.f32 1.442695, %v380_v15 }
 0x4a7   :  { %1023 = vpow2.f32 %v382_v16 }
 0x4a8   :  { %v717_v17 = vpop.f32.mrf.mxu1 }
 0x4a9   :  { %v718_v18 = vadd.f32 %v717_v17, %v1324_v60 }
 0x4aa   :  { %v379_v19 = vpop.xlane.xlu1 %378 }
 0x4ab   :  { %v381_v20 = vsub.f32 %v372_v3, %v379_v19  ;;  %v723_v21 = vsel %vm243_vm9, %v718_v18, -inf }
 0x4ac   :  { %724 = vmax.xlane.f32.xlu2 %v723_v21 }
 0x4ad   :  { %v1377_v22 = vpop.eup %1023  ;;  %v384_v24 = vmul.f32 1.442695, %v381_v20 }
 0x4ae   :  { %v386_v23 = vsel %vm243_vm9, %v1377_v22, 0.0 }
 0x4af   :  { %387 = vadd.xlane.f32.xlu0 %v386_v23  ;;  %1025 = vpow2.f32 %v384_v24 }
 0x4b0   :  { %v720_v25 = vpop.f32.mrf.mxu1 }
 0x4b1   :  { %v721_v26 = vadd.f32 %v720_v25, %v1328_v1 }
 0x4b2   :  { %v564_v27 = vpop.xlane.xlu0 %563 }
 0x4b3   :  { %v568_v28 = vsub.f32 %v557_v7, %v564_v27  ;;  %v726_v60 = vsel %vm243_vm9, %v721_v26, -inf }
 0x4b4   :  { %727 = vmax.xlane.f32.xlu2 %v726_v60 }
 0x4b5   :  { %v570_v29 = vmul.f32 1.442695, %v568_v28  ;;  %v1383_v30 = vpop.eup %1025 }
 0x4b6   :  { %v389_v33 = vsel %vm243_vm9, %v1383_v30, 0.0 }
 0x4b7   :  { %1027 = vpow2.f32 %v570_v29 }
 0x4ba   :  { %v567_v31 = vpop.xlane.xlu1 %566 }
 0x4bb   :  { %v569_v32 = vsub.f32 %v560_v10, %v567_v31 }
 0x4bc   :  { %390 = vadd.xlane.f32.xlu2 %v389_v33 }
 0x4bd   :  { %v1387_v34 = vpop.eup %1027  ;;  %v572_v35 = vmul.f32 1.442695, %v569_v32 }
 0x4be   :  { %v574_v1 = vsel %vm243_vm9, %v1387_v34, 0.0 }
 0x4bf   :  { %1029 = vpow2.f32 %v572_v35  ;;  %575 = vadd.xlane.f32.xlu0 %v574_v1 }
 0x4c5   :  { %v1391_v36 = vpop.eup %1029 }
 0x4c6   :  { %v577_v38 = vsel %vm243_vm9, %v1391_v36, 0.0 }
 0x4c7   :  { %578 = vadd.xlane.f32.xlu0 %v577_v38 }
 0x4d4   :  { %991 = vrot.lane.b32.xlu2 %v1332_v6, %s1216_s19 }
 0x4db   :  { %1001 = vrot.lane.b32.xlu0 %v1332_v6, %s1217_s20 }
 0x51f   :  { %v725_v39 = vpop.xlane.xlu2 %724 }
 0x520   :  { %v729_v40 = vsub.f32 %v718_v18, %v725_v39 }
 0x522   :  { %v388_v41 = vpop.xlane.xlu0 %387  ;;  %v731_v42 = vmul.f32 1.442695, %v729_v40 }
 0x523   :  { %1031 = vrcp.f32 %v388_v41  ;;  %v403_v53 = vand.u32 2147483648, %v388_v41  ;;  %v401_v54 = vand.u32 2147483647, %v388_v41  ;;  %vm397_vm4 = vweird.f32 %v388_v41 }
 0x524   :  { %1033 = vpow2.f32 %v731_v42 }
 0x525   :  { %v404_v57 = vor.u32 1.1754944e-38, %v403_v53  ;;  %vm402_vm6 = vcmp.eq.f32.partialorder %v401_v54, 8.507059e+37 }
 0x527   :  { %v728_v43 = vpop.xlane.xlu2 %727 }
 0x528   :  { %v730_v45 = vsub.f32 %v721_v26, %v728_v43 }
 0x529   :  { %v1032_v44 = vpop.eup %1031 }
 0x52a   :  { %v393_v47 = vmul.f32 %v1032_v44, %v388_v41  ;;  %v1397_v48 = vpop.eup %1033  ;;  %v733_v49 = vmul.f32 1.442695, %v730_v45  ;;  %vm398_vm3 = vweird.f32 %v1032_v44 }
 0x52b   :  { %v735_v51 = vsel %vm243_vm9, %v1397_v48, 0.0  ;;  %vm399_vm5 = vmor %vm397_vm4, %vm398_vm3 }
 0x52c   :  { %v394_v50 = vsub.f32 1.0, %v393_v47  ;;  %1035 = vpow2.f32 %v733_v49  ;;  %736 = vadd.xlane.f32.xlu1 %v735_v51  ;;  %v202_v49 = vld [vmem:[#allocation8 + $0x8] sm:$0xff] }
 0x52d   :  { %486 = vmatpush.msra.mxu0 %v202_v49 }
 0x52e   :  { %v395_v52 = vmul.f32 %v1032_v44, %v394_v50 }
 0x52f   :  { %v391_v55 = vpop.xlane.xlu2 %390 }
 0x530   :  { %v396_v56 = vadd.f32 %v1032_v44, %v395_v52  ;;  %1037 = vrcp.f32 %v391_v55  ;;  %v417_v15 = vand.u32 2147483648, %v391_v55  ;;  %v415_v19 = vand.u32 2147483647, %v391_v55 }
 0x531   :  { %vm411_vm10 = vweird.f32 %v391_v55 }
 0x532   :  { %v576_v58 = vpop.xlane.xlu0 %575  ;;  %v400_v59 = vsel %vm399_vm5, %v1032_v44, %v396_v56  ;;  %v1401_v61 = vpop.eup %1035  ;;  %v418_v24 = vor.u32 1.1754944e-38, %v417_v15  ;;  %vm416_vm14 = vcmp.eq.f32.partialorder %v415_v19, 8.507059e+37 }
 0x533   :  { %1039 = vrcp.f32 %v576_v58  ;;  %v738_v62 = vsel %vm243_vm9, %v1401_v61, 0.0  ;;  %v405_v63 = vsel %vm402_vm6, %v404_v57, %v400_v59  ;;  %v591_v20 = vand.u32 2147483648, %v576_v58 }
 0x534   :  { %739 = vadd.xlane.f32.xlu1 %v738_v62  ;;  %v1406_v3 = vmul.f32 %v1377_v22, %v405_v63  ;;  %v589_v23 = vand.u32 2147483647, %v576_v58  ;;  %vm585_vm13 = vweird.f32 %v576_v58 }
 0x535   :  { %v592_v28 = vor.u32 1.1754944e-38, %v591_v20 }
 0x536   :  { %v1038_v4 = vpop.eup %1037  ;;  %424 = vrot.lane.b32.xlu2 %v1406_v3, %s1211_s12  ;;  %vm590_vm1 = vcmp.eq.f32.partialorder %v589_v23, 8.507059e+37 }
 0x537   :  { %v407_v5 = vmul.f32 %v1038_v4, %v391_v55  ;;  %v992_v7 = vpop.permute.xlu2 %991  ;;  %vm412_vm7 = vweird.f32 %v1038_v4 }
 0x538   :  { %v993_v9 = vunpack.i.l.bf16 %v992_v7  ;;  %v994_v16 = vunpack.i.h.bf16 %v992_v7  ;;  %vm413_vm12 = vmor %vm411_vm10, %vm412_vm7 }
 0x539   :  { %v1040_v8 = vpop.eup %1039  ;;  %v408_v10 = vsub.f32 1.0, %v407_v5 }
 0x53a   :  { %v581_v11 = vmul.f32 %v1040_v8, %v576_v58  ;;  %v579_v14 = vpop.xlane.xlu0 %578  ;;  %456 = vmatpush.msrb.mxu2 %v993_v9  ;;  %vm586_vm11 = vweird.f32 %v1040_v8 }
 0x53b   :  { %1041 = vrcp.f32 %v579_v14  ;;  %v409_v17 = vmul.f32 %v1038_v4, %v408_v10  ;;  %vm587_vm15 = vmor %vm585_vm13, %vm586_vm11  ;;  %vm599_vm3 = vweird.f32 %v579_v14  ;;  %v603_v40 = vand.u32 2147483647, %v579_v14 }
 0x53c   :  { %v582_v18 = vsub.f32 1.0, %v581_v11  ;;  %457 = vmatpush.msrb.mxu2 %v994_v16 }
 0x53d   :  { %939 = vmatmul.msk.f32.vlgmr.msrb.gmra.mxu2 %vm243_vm9, %v1406_v3  ;;  %v410_v22 = vadd.f32 %v1038_v4, %v409_v17  ;;  %vm604_vm5 = vcmp.eq.f32.partialorder %v603_v40, 8.507059e+37 }
 0x53e   :  { %v583_v21 = vmul.f32 %v1040_v8, %v582_v18 }
 0x53f   :  { %v414_v25 = vsel %vm413_vm12, %v1038_v4, %v410_v22 }
 0x540   :  { %v584_v26 = vadd.f32 %v1040_v8, %v583_v21  ;;  %v419_v60 = vsel %vm416_vm14, %v418_v24, %v414_v25 }
 0x541   :  { %v1042_v27 = vpop.eup %1041  ;;  %v1413_v31 = vmul.f32 %v1383_v30, %v419_v60  ;;  %v605_v30 = vand.u32 2147483648, %v579_v14 }
 0x542   :  { %v595_v29 = vmul.f32 %v1042_v27, %v579_v14  ;;  %v588_v32 = vsel %vm587_vm15, %v1040_v8, %v584_v26  ;;  %vm600_vm2 = vweird.f32 %v1042_v27  ;;  %v203_v14 = vld [vmem:[#allocation8 + $0x10] sm:$0xff] }
 0x543   :  { %v593_v33 = vsel %vm590_vm1, %v592_v28, %v588_v32  ;;  %426 = vrot.lane.b32.xlu0 %v1413_v31, %s1211_s12  ;;  %vm601_vm4 = vmor %vm599_vm3, %vm600_vm2  ;;  %v606_v43 = vor.u32 1.1754944e-38, %v605_v30  ;;  %674 = vmatpush.msrb.mxu0 %v203_v14  ;;  %vm883_vm1 = vcmask 195584  }
 0x544   :  { %v596_v35 = vsub.f32 1.0, %v595_v29  ;;  %v1418_v1 = vmul.f32 %v1387_v34, %v593_v33 }
 0x545   :  { %940 = vmatmul.msk.f32.gmra.mxu2 %vm243_vm9, %v1413_v31 }
 0x546   :  { %v597_v38 = vmul.f32 %v1042_v27, %v596_v35  ;;  %612 = vrot.lane.b32.xlu2 %v1418_v1, %s1211_s12  ;;  %v204_v35 = vld [vmem:[#allocation8 + $0x18] sm:$0xff] }
 0x548   :  { %v598_v39 = vadd.f32 %v1042_v27, %v597_v38 }
 0x54a   :  { %v602_v34 = vsel %vm601_vm4, %v1042_v27, %v598_v39 }
 0x54b   :  { %v607_v45 = vsel %vm604_vm5, %v606_v43, %v602_v34 }
 0x54c   :  { %v1428_v47 = vmul.f32 %v1391_v36, %v607_v45 }
 0x54d   :  { %v1002_v41 = vpop.permute.xlu0 %1001  ;;  %996 = vrot.lane.b32.xlu1 %v1332_v6, %s1218_s21 }
 0x54e   :  { %v1003_v42 = vunpack.i.l.bf16 %v1002_v41  ;;  %v1004_v44 = vunpack.i.h.bf16 %v1002_v41 }
 0x550   :  { %644 = vmatpush.msra.mxu2 %v1003_v42 }
 0x552   :  { %645 = vmatpush.msra.mxu2 %v1004_v44 }
 0x553   :  { %949 = vmatmul.msk.f32.vlgmr.msra.gmra.mxu2 %vm243_vm9, %v1418_v1 }
 0x554   :  { %835 = vmatpush.msrb.mxu2 %v204_v35 }
 0x555   :  { %614 = vrot.lane.b32.xlu1 %v1428_v47, %s1211_s12 }
 0x55b   :  { %950 = vmatmul.msk.f32.gmra.mxu2 %vm243_vm9, %v1428_v47 }
 0x55d   :  { %294 = vrot.lane.b32.xlu1 %v1341_v37, %s1211_s12 }
 0x590   :  { %v425_v15 = vpop.permute.xlu2 %424 }
 0x591   :  { %v430_v24 = vadd.f32 %v425_v15, %v1406_v3 }
 0x59f   :  { %v737_v6 = vpop.xlane.xlu1 %736 }
 0x5a0   :  { %1043 = vrcp.f32 %v737_v6  ;;  %v752_v36 = vand.u32 2147483648, %v737_v6  ;;  %v750_v55 = vand.u32 2147483647, %v737_v6  ;;  %vm746_vm7 = vweird.f32 %v737_v6  ;;  %v613_v20 = vpop.permute.xlu2 %612 }
 0x5a1   :  { %v618_v25 = vadd.f32 %v613_v20, %v1418_v1 }
 0x5a2   :  { %v753_v58 = vor.u32 1.1754944e-38, %v752_v36  ;;  %vm751_vm11 = vcmp.eq.f32.partialorder %v750_v55, 8.507059e+37 }
 0x5a6   :  { %v1044_v50 = vpop.eup %1043 }
 0x5a7   :  { %v742_v51 = vmul.f32 %v1044_v50, %v737_v6  ;;  %v740_v52 = vpop.xlane.xlu1 %739  ;;  %vm747_vm6 = vweird.f32 %v1044_v50 }
 0x5a8   :  { %1045 = vrcp.f32 %v740_v52  ;;  %vm748_vm10 = vmor %vm746_vm7, %vm747_vm6  ;;  %v766_v7 = vand.u32 2147483648, %v740_v52  ;;  %v764_v9 = vand.u32 2147483647, %v740_v52  ;;  %vm760_vm13 = vweird.f32 %v740_v52 }
 0x5a9   :  { %v743_v53 = vsub.f32 1.0, %v742_v51 }
 0x5aa   :  { %v767_v16 = vor.u32 1.1754944e-38, %v766_v7  ;;  %vm765_vm15 = vcmp.eq.f32.partialorder %v764_v9, 8.507059e+37 }
 0x5ab   :  { %v744_v54 = vmul.f32 %v1044_v50, %v743_v53 }
 0x5ad   :  { %v745_v56 = vadd.f32 %v1044_v50, %v744_v54 }
 0x5ae   :  { %v1046_v57 = vpop.eup %1045 }
 0x5af   :  { %v756_v59 = vmul.f32 %v1046_v57, %v740_v52  ;;  %v749_v62 = vsel %vm748_vm10, %v1044_v50, %v745_v56  ;;  %vm761_vm12 = vweird.f32 %v1046_v57  ;;  %v1008_v56 = vld [vmem:[%s1492_s7] ss:$0 sm:$0xff] }
 0x5b0   :  { %v754_v63 = vsel %vm751_vm11, %v753_v58, %v749_v62  ;;  %vm762_vm14 = vmor %vm760_vm13, %vm761_vm12 }
 0x5b1   :  { %v757_v4 = vsub.f32 1.0, %v756_v59  ;;  %v769_v5 = vmul.f32 %v1397_v48, %v754_v63 }
 0x5b3   :  { %v758_v8 = vmul.f32 %v1046_v57, %v757_v4  ;;  %773 = vrot.lane.b32.xlu0 %v769_v5, %s1211_s12 }
 0x5b5   :  { %v427_v10 = vpop.permute.xlu0 %426  ;;  %v759_v11 = vadd.f32 %v1046_v57, %v758_v8 }
 0x5b6   :  { %v431_v17 = vadd.f32 %v427_v10, %v1413_v31 }
 0x5b7   :  { %v763_v18 = vsel %vm762_vm14, %v1046_v57, %v759_v11 }
 0x5b8   :  { %859 = vrot.lane.b32.xlu1 %v431_v17, %s1203_s18  ;;  %v768_v48 = vsel %vm765_vm15, %v767_v16, %v763_v18 }
 0x5b9   :  { %v770_v19 = vmul.f32 %v1401_v61, %v768_v48 }
 0x5bb   :  { %296 = vrot.lane.b32.xlu0 %v1345_v46, %s1211_s12  ;;  %775 = vrot.lane.b32.xlu2 %v770_v19, %s1211_s12 }
 0x5bf   :  { %v997_v21 = vpop.permute.xlu1 %996 }
 0x5c0   :  { %v998_v22 = vunpack.i.l.bf16 %v997_v21  ;;  %v459_v23 = vpop.f32.mrf.mxu2  ;;  %v999_v26 = vunpack.i.h.bf16 %v997_v21 }
 0x5c1   :  { %941 = vmatmul.msk.f32.vlgmr.msra.gmra.mxu0 %vm211_vm8, %v459_v23 }
 0x5c2   :  { %805 = vmatpush.msra.mxu3 %v998_v22 }
 0x5c3   :  { %857 = vrot.lane.b32.xlu2 %v430_v24, %s1203_s18  ;;  %865 = vrot.lane.b32.xlu0 %v618_v25, %s1219_s22 }
 0x5c4   :  { %806 = vmatpush.msra.mxu3 %v999_v26 }
 0x5c5   :  { %957 = vmatmul.msk.f32.vlgmr.msra.gmra.mxu3 %vm243_vm9, %v769_v5 }
 0x5c7   :  { %v615_v61 = vpop.permute.xlu1 %614 }
 0x5c8   :  { %v619_v27 = vadd.f32 %v615_v61, %v1428_v47  ;;  %v462_v28 = vpop.f32.mrf.mxu2 }
 0x5c9   :  { %942 = vmatmul.msk.f32.gmra.mxu0 %vm211_vm8, %v462_v28 }
 0x5cb   :  { %867 = vrot.lane.b32.xlu2 %v619_v27, %s1219_s22 }
 0x5cd   :  { %958 = vmatmul.msk.f32.gmra.mxu3 %vm243_vm9, %v770_v19 }
 0x5cf   :  { %v295_v30 = vpop.permute.xlu1 %294 }
 0x5d0   :  { %v300_v49 = vadd.f32 %v295_v30, %v1341_v37 }
 0x5d6   :  { %v647_v3 = vpop.f32.mrf.mxu2 }
 0x5d7   :  { %951 = vmatmul.msk.f32.vlgmr.msrb.gmra.mxu0 %vm211_vm8, %v647_v3 }
 0x5de   :  { %v650_v60 = vpop.f32.mrf.mxu2 }
 0x5df   :  { %952 = vmatmul.msk.f32.gmra.mxu0 %vm211_vm8, %v650_v60 }
 0x615   :  { %v776_v29 = vpop.permute.xlu2 %775 }
 0x616   :  { %v780_v31 = vadd.f32 %v776_v29, %v770_v19 }
 0x618   :  { %875 = vrot.lane.b32.xlu0 %v780_v31, %s1220_s1 }
 0x61d   :  { %v858_v40 = vpop.permute.xlu2 %857 }
 0x625   :  { %v774_v32 = vpop.permute.xlu0 %773  ;;  %v868_v44 = vpop.permute.xlu2 %867 }
 0x626   :  { %v779_v33 = vadd.f32 %v774_v32, %v769_v5 }
 0x628   :  { %873 = vrot.lane.b32.xlu1 %v779_v33, %s1220_s1 }
 0x62a   :  { %v860_v34 = vpop.permute.xlu1 %859 }
 0x62d   :  { %v297_v39 = vpop.permute.xlu0 %296 }
 0x62e   :  { %v301_v42 = vadd.f32 %v297_v39, %v1345_v46  ;;  %v879_v46 = vsel %vm211_vm8, %v300_v49, %v858_v40 }
 0x630   :  { %v880_v43 = vsel %vm211_vm8, %v301_v42, %v860_v34 }
 0x631   :  { %v882_v45 = vsel %vm243_vm9, %v880_v43, %v868_v44 }
 0x635   :  { %v866_v41 = vpop.permute.xlu0 %865 }
 0x636   :  { %v881_v50 = vsel %vm243_vm9, %v879_v46, %v866_v41 }
 0x63e   :  { %v488_v37 = vpop.f32.mrf.mxu0 }
 0x63f   :  { %v518_v54 = vadd.f32 %v1371_v12, %v488_v37 }
 0x646   :  { %v491_v53 = vpop.f32.mrf.mxu0 }
 0x647   :  { %v521_v63 = vadd.f32 %v1373_v13, %v491_v53 }
 0x648   :  { %v808_v1 = vpop.f32.mrf.mxu3 }
 0x649   :  { %959 = vmatmul.msk.f32.vlgmr.msrb.gmra.mxu2 %vm211_vm8, %v808_v1 }
 0x650   :  { %v811_v38 = vpop.f32.mrf.mxu3 }
 0x651   :  { %960 = vmatmul.msk.f32.gmra.mxu2 %vm211_vm8, %v811_v38 }
 0x654   :  { %v676_v36 = vpop.f32.mrf.mxu0 }
 0x655   :  { %v682_v55 = vadd.f32 %v676_v36, %v518_v54 }
 0x65c   :  { %v679_v62 = vpop.f32.mrf.mxu0 }
 0x65d   :  { %v683_v5 = vadd.f32 %v679_v62, %v521_v63 }
 0x68a   :  { %v876_v47 = vpop.permute.xlu0 %875 }
 0x68b   :  { %v885_v6 = vsel %vm883_vm1, %v882_v45, %v876_v47 }
 0x68c   :  { %887 = vst.msk [vmem:[#allocation11 + $0x8] sm:$0xff] %vm98_vm0, %v885_v6 }
 0x69a   :  { %v874_v51 = vpop.permute.xlu1 %873 }
 0x69b   :  { %v884_v52 = vsel %vm883_vm1, %v881_v50, %v874_v51 }
 0x69c   :  { %886 = vst.msk [vmem:[#allocation11] sm:$0xff] %vm98_vm0, %v884_v52 }
 0x69d   :  { %913 = dma.vmem_to_hbm [thread:$0]  %s906_s23, 256, %s908_s26, [#allocation12], %s1202_s17, %s1202_s17, %s1203_s18  }
 0x6cc   :  { %v837_v57 = vpop.f32.mrf.mxu2 }
 0x6cd   :  { %v843_v58 = vadd.f32 %v837_v57, %v682_v55 }
 0x6cf   :  { %v849_v59 = vadd.f32 %v1008_v56, %v843_v58 }
 0x6d1   :  { %v851_v4 = vadd.f32 %v849_v59, %v1297_v0 }
 0x6d3   :  { %853 = vst.msk [vmem:[#allocation10] sm:$0xff] %vm98_vm0, %v851_v4 }
 0x6d4   :  { %v840_v7 = vpop.f32.mrf.mxu2 }
 0x6d5   :  { %v844_v8 = vadd.f32 %v840_v7, %v683_v5 }
 0x6d7   :  { %v850_v12 = vadd.f32 %v1008_v56, %v844_v8 }
 0x6d9   :  { %v852_v9 = vadd.f32 %v850_v12, %v1301_v2 }
 0x6db   :  { %854 = vst.msk [vmem:[#allocation10 + $0x8] sm:$0xff] %vm98_vm0, %v852_v9 }
 0x6dc   :  { %900 = dma.vmem_to_hbm [thread:$0]  %s893_s6, 256, %s895_s30, [#allocation4], %s1202_s17, %s1202_s17, %s1203_s18  }
 0x6dd   :  { %1197 = dma.done.wait [#allocation4], 256  }
 0x6de   :  { %1198 = vsyncadd [#allocation4], 4294967040 }
 0x6df   :  { %1199 = dma.done.wait [#allocation12], 256  }
 0x6e0   :  { %1200 = vsyncadd [#allocation12], 4294967040 }
 0x6e1   :  { %922 = vsyncpa [#allocation3], 1 }
 0x6e2   :  { %923 = vsyncpa [#allocation6], 1 }
 0x6e3   :  { %924 = vsyncpa [#allocation9], 1 }
 0x6e4   :  { %925 = vsyncpa [#allocation4], 1 }
 0x6e5   :  { %926 = vsyncpa [#allocation12], 1 }

</bundles_post_ra>
